<compile_context>
chip_gen: v7x
topology: tpu7x:2x2x1
jax: 0.10.0
libtpu: 0.0.40
codegen_flags: <defaults>
</compile_context>

<pallas_src>
from typing import Callable, List, Sequence

import jax
import jax.numpy as jnp
from jax.experimental import pallas as pl
from jax.experimental.pallas import tpu as pltpu


# ----------------------------------------------------------------------------
# Pallas kernel: per-branch affine  y = x @ W + b   (MXU matmul + VPU add)
# ----------------------------------------------------------------------------
def _parallel_affine_kernel(x_ref, w_ref, b_ref, o_ref):
    # x_ref: (Mp, Kp) bf16, w_ref: (Kp, Np) bf16, b_ref: (1, Np) f32,
    # o_ref: (Mp, Np) f32.  Np is a multiple of 128 -> lane-dense stores.
    acc = jnp.dot(x_ref[...], w_ref[...], preferred_element_type=jnp.float32)
    o_ref[...] = acc + b_ref[...]


def _round_up(v: int, m: int) -> int:
    return ((v + m - 1) // m) * m


def _fused_affine_call(x2d_list: Sequence[jax.Array],
                       ws: Sequence[jax.Array],
                       bs: Sequence[jax.Array]) -> List[jax.Array]:
    """Run all branches y_i = x_i @ W_i + b_i in ONE pallas_call.

    x2d_list[i]: (M, Fin_i) f32, ws[i]: (Fin_i, Fout_i), bs[i]: (Fout_i,).
    Returns a list of (M, Fout_i) f32 arrays.
    """
    n = len(x2d_list)
    assert n == len(ws) == len(bs) and n >= 1
    M = x2d_list[0].shape[0]
    assert all(x.shape[0] == M for x in x2d_list)

    # Common padded shapes: sublane-aligned M, lane-aligned K and N.
    Mp = _round_up(max(M, 1), 8)
    Kp = _round_up(max(x.shape[1] for x in x2d_list), 128)
    Np = _round_up(max(w.shape[1] for w in ws), 128)

    def pad2(a, r, c):
        return jnp.pad(a, ((0, r - a.shape[0]), (0, c - a.shape[1])))

    # Zero-padding K is exact (extra products are 0); padded N columns are
    # garbage-free (zero W cols + zero bias) and sliced away below.
    x_stk = jnp.stack([pad2(x, Mp, Kp) for x in x2d_list]).astype(jnp.bfloat16)
    w_stk = jnp.stack([pad2(w, Kp, Np) for w in ws]).astype(jnp.bfloat16)
    b_stk = jnp.stack(
        [pad2(b.reshape(1, -1).astype(jnp.float32), 1, Np) for b in bs])

    flops = 2 * n * Mp * Kp * Np
    bytes_accessed = (x_stk.size * 2 + w_stk.size * 2 + b_stk.size * 4
                      + n * Mp * Np * 4)

    out = pl.pallas_call(
        _parallel_affine_kernel,
        out_shape=jax.ShapeDtypeStruct((n, Mp, Np), jnp.float32),
        grid_spec=pl.GridSpec(
            grid=(n,),
            in_specs=[
                pl.BlockSpec((None, Mp, Kp), lambda i: (i, 0, 0)),
                pl.BlockSpec((None, Kp, Np), lambda i: (i, 0, 0)),
                pl.BlockSpec((None, 1, Np), lambda i: (i, 0, 0)),
            ],
            out_specs=pl.BlockSpec((None, Mp, Np), lambda i: (i, 0, 0)),
        ),
        compiler_params=pltpu.CompilerParams(
            # Branch axis is independent -> shardable across v7x's 2 TCs.
            dimension_semantics=("parallel",),
        ),
        cost_estimate=pl.CostEstimate(
            flops=flops, transcendentals=0, bytes_accessed=bytes_accessed),
    )(x_stk, w_stk, b_stk)

    return [out[i, :M, :ws[i].shape[1]] for i in range(n)]


# ----------------------------------------------------------------------------
# SuprLayer equivalents (plain Python objects; no torch)
# ----------------------------------------------------------------------------
class SuprLayer:
    epsilon = 1e-12

    def em_batch(self):
        pass

    def em_update(self, *args, **kwargs):
        pass


class AffineSuprLayer(SuprLayer):
    """Concrete SuprLayer branch: y = x @ W + b, computed in Pallas."""

    def __init__(self, w: jax.Array, b: jax.Array):
        super().__init__()
        self.w = w
        self.b = b

    def __call__(self, x: jax.Array) -> jax.Array:
        B, S, Fin = x.shape
        (y2d,) = _fused_affine_call([x.reshape(B * S, Fin)], [self.w], [self.b])
        return y2d.reshape(B, S, self.w.shape[1])


class Parallel(SuprLayer):
    """Faithful port of the PyTorch Parallel container.

    Semantics: [n(x_i) for n, x_i in zip(nets, x)].  When every branch is an
    AffineSuprLayer (the concrete sub-net used here), all branches are fused
    into a single Pallas launch; otherwise it falls back to per-branch calls.
    """

    def __init__(self, nets: Sequence[Callable]):
        super().__init__()
        self.nets = list(nets)

    def __call__(self, x: List[jax.Array]) -> List[jax.Array]:
        # TODO(synk): the original module accepts arbitrary SuprLayer sub-nets;
        # here each branch is a concrete Pallas-backed affine SuprLayer.
        fusible = (len(self.nets) == len(x)
                   and all(isinstance(n, AffineSuprLayer) for n in self.nets)
                   and len({xi.shape[0] * xi.shape[1] for xi in x}) == 1)
        if not fusible:
            return [n(xi) for n, xi in zip(self.nets, x)]

        shapes = [xi.shape for xi in x]
        x2d = [xi.reshape(-1, xi.shape[-1]) for xi in x]
        outs2d = _fused_affine_call(x2d,
                                    [n.w for n in self.nets],
                                    [n.b for n in self.nets])
        return [o.reshape(s[0], s[1], n.w.shape[1])
                for o, s, n in zip(outs2d, shapes, self.nets)]


# ----------------------------------------------------------------------------
# Deterministic parameter init + demo
# ----------------------------------------------------------------------------
def _init_affine(key, fin, fout, dtype=jnp.float32):
    kw, kb = jax.random.split(key)
    w = jax.random.normal(kw, (fin, fout), dtype) * (1.0 / jnp.sqrt(fin))
    b = jax.random.normal(kb, (fout,), dtype) * 0.01
    return w, b


if __name__ == "__main__":
    key = jax.random.PRNGKey(0)
    k0, k1, kx0, kx1 = jax.random.split(key, 4)

    # Two parallel branches with independent inputs and parameters.
    B, S = 2, 8
    F_IN = (32, 48)
    F_OUT = (32, 64)

    w0, b0 = _init_affine(k0, F_IN[0], F_OUT[0])
    w1, b1 = _init_affine(k1, F_IN[1], F_OUT[1])

    net = Parallel([AffineSuprLayer(w0, b0), AffineSuprLayer(w1, b1)])

    x0 = jax.random.normal(kx0, (B, S, F_IN[0]), jnp.float32)
    x1 = jax.random.normal(kx1, (B, S, F_IN[1]), jnp.float32)

    outs = net([x0, x1])
    outs = [jax.block_until_ready(o) for o in outs]

    # Reference in plain JAX, using the same bf16-cast operands the kernel
    # sees (f32 accumulation on both sides).
    def ref_affine(x, w, b):
        xb = x.reshape(-1, x.shape[-1]).astype(jnp.bfloat16).astype(jnp.float32)
        wb = w.astype(jnp.bfloat16).astype(jnp.float32)
        return jnp.matmul(xb, wb, precision=jax.lax.Precision.HIGHEST) + b

    ref0 = ref_affine(x0, w0, b0)
    ref1 = ref_affine(x1, w1, b1)

    assert outs[0].shape == (B, S, F_OUT[0])
    assert outs[1].shape == (B, S, F_OUT[1])
    assert jnp.allclose(outs[0].reshape(-1, F_OUT[0]), ref0, atol=1e-4)
    assert jnp.allclose(outs[1].reshape(-1, F_OUT[1]), ref1, atol=1e-4)

    print("KERNEL_OK")
</pallas_src>

<mosaic_0001>
module attributes {stable_mosaic.version = 11 : i64} {
  func.func @_parallel_affine_kernel(%arg0: i32, %arg1: memref<1x16x128xbf16, #tpu.memory_space<vmem>>, %arg2: memref<1x128x128xbf16, #tpu.memory_space<vmem>>, %arg3: memref<1x1x128xf32, #tpu.memory_space<vmem>>, %arg4: memref<1x16x128xf32, #tpu.memory_space<vmem>>) attributes {dimension_semantics = [#tpu.dimension_semantics<parallel>], iteration_bounds = array<i64: 2>, scalar_prefetch = 0 : i64, scratch_operands = 0 : i64, tpu.core_type = #tpu.core_type<tc>, window_params = [{transform_indices = @transform_0, window_bounds = array<i64: 1, 16, 128>}, {transform_indices = @transform_1, window_bounds = array<i64: 1, 128, 128>}, {transform_indices = @transform_2, window_bounds = array<i64: 1, 1, 128>}, {transform_indices = @transform_3, window_bounds = array<i64: 1, 16, 128>}]} {
    %c0 = arith.constant 0 : index
    %c0_0 = arith.constant 0 : index
    %c0_1 = arith.constant 0 : index
    %0 = vector.load %arg1[%c0, %c0_0, %c0_1] : memref<1x16x128xbf16, #tpu.memory_space<vmem>>, vector<1x16x128xbf16>
    %1 = vector.shape_cast %0 : vector<1x16x128xbf16> to vector<16x128xbf16>
    %c0_2 = arith.constant 0 : index
    %c0_3 = arith.constant 0 : index
    %c0_4 = arith.constant 0 : index
    %2 = vector.load %arg2[%c0_2, %c0_3, %c0_4] : memref<1x128x128xbf16, #tpu.memory_space<vmem>>, vector<1x128x128xbf16>
    %3 = vector.shape_cast %2 : vector<1x128x128xbf16> to vector<128x128xbf16>
    %cst = arith.constant dense<0.000000e+00> : vector<16x128xf32>
    %4 = tpu.matmul %1, %3, %cst {dimension_numbers = #tpu.dot_dimension_numbers<[1], [0], [0], [1], [0, 0, 1, 1], [], []>} : vector<16x128xbf16>, vector<128x128xbf16>, vector<16x128xf32> -> vector<16x128xf32>
    %c0_5 = arith.constant 0 : index
    %c0_6 = arith.constant 0 : index
    %c0_7 = arith.constant 0 : index
    %5 = vector.load %arg3[%c0_5, %c0_6, %c0_7] : memref<1x1x128xf32, #tpu.memory_space<vmem>>, vector<1x1x128xf32>
    %6 = vector.shape_cast %5 : vector<1x1x128xf32> to vector<1x128xf32>
    %7 = vector.broadcast %6 : vector<1x128xf32> to vector<16x128xf32>
    %8 = arith.addf %4, %7 : vector<16x128xf32>
    %c0_8 = arith.constant 0 : index
    %c0_9 = arith.constant 0 : index
    %c0_10 = arith.constant 0 : index
    %9 = vector.load %arg4[%c0_8, %c0_9, %c0_10] : memref<1x16x128xf32, #tpu.memory_space<vmem>>, vector<1x16x128xf32>
    %10 = vector.shape_cast %9 : vector<1x16x128xf32> to vector<16x128xf32>
    %11 = vector.shape_cast %8 : vector<16x128xf32> to vector<1x16x128xf32>
    tpu.vector_store %arg4[%c0_8, %c0_9, %c0_10], %11 {strides = array<i32>} : memref<1x16x128xf32, #tpu.memory_space<vmem>>, vector<1x16x128xf32>,
    return
  }
  func.func @transform_0(%arg0: i32) -> (i32, i32, i32) {
    %c0_i32 = arith.constant 0 : i32
    %c0_i32_0 = arith.constant 0 : i32
    %c0_i32_1 = arith.constant 0 : i32
    return %arg0, %c0_i32, %c0_i32_0 : i32, i32, i32
  }
  func.func @transform_1(%arg0: i32) -> (i32, i32, i32) {
    %c0_i32 = arith.constant 0 : i32
    %c0_i32_0 = arith.constant 0 : i32
    %c0_i32_1 = arith.constant 0 : i32
    return %arg0, %c0_i32, %c0_i32_0 : i32, i32, i32
  }
  func.func @transform_2(%arg0: i32) -> (i32, i32, i32) {
    %c0_i32 = arith.constant 0 : i32
    %c0_i32_0 = arith.constant 0 : i32
    %c0_i32_1 = arith.constant 0 : i32
    return %arg0, %c0_i32, %c0_i32_0 : i32, i32, i32
  }
  func.func @transform_3(%arg0: i32) -> (i32, i32, i32) {
    %c0_i32 = arith.constant 0 : i32
    %c0_i32_0 = arith.constant 0 : i32
    %c0_i32_1 = arith.constant 0 : i32
    return %arg0, %c0_i32, %c0_i32_0 : i32, i32, i32
  }
}

</mosaic_0001>

<bundles_post_ra>
// kernel: tpu_custom_call.1
= control target key start
LH: loop header
LB: loop body
LE: loop exit
PB: predicated region body
PF: predicated region fallthrough
CT: control target
= control target key end

     0   :  { %8 = vsyncpa [#allocation3], 0  ;;  %s999_s0 = inlined_call_operand.hbm [shape: bf16[2,16,128], index: 0, kind: input, shape index: {}]   ;;  %s1000_s1 = inlined_call_operand.hbm [shape: bf16[2,128,128], index: 1, kind: input, shape index: {}]   ;;  %s1001_s2 = inlined_call_operand.vmem [shape: f32[2,1,128], index: 2, kind: input, shape index: {}]   ;;  %s1002_s3 = inlined_call_operand.hbm [shape: f32[2,16,128], index: 3, kind: output, shape index: {}]  }
   0x1   :  { %10 = vsyncpa [#allocation3 + $0x1], 0 }
   0x2   :  { %11 = vsyncpa [#allocation6], 0 }
   0x3   :  { %13 = vsyncpa [#allocation6 + $0x1], 0 }
   0x4   :  { %14 = vsyncpa [#allocation4], 0 }
   0x5   :  { %16 = vsyncpa [#allocation4 + $0x1], 0  ;;  %s772_s12 = smov 0   ;;  %s774_s13 = smov 0  }
   0x6   :  { %s776_s14 = smov 0   ;;  %s778_s15 = smov 0  }
   0x7 LB: > { %s793_s16 = sadd.s32 4294967295, %s741_s15   ;;  %s485_s17 = sadd.s32 4294967294, %s741_s15   ;;  %s741_s15 = sphi %s778_s15, %s1018_s15   ;;  %s737_s14 = sphi %s776_s14, %s1017_s14   ;;  %s733_s13 = sphi %s774_s13, %s1016_s13   ;;  %s729_s12 = sphi %s772_s12, %s1015_s12  }
   0x8   : > { %s797_s18 = sadd.s32 1, %s741_s15   ;;  %s29_s19 = sadd.s32 1, %s737_s14 }
   0x9   : > { %s26_s20 = ssub.s32 %s741_s15, %s797_s18  ;;  %p36_p0 = scmp.ne.s32.totalorder %s737_s14, %s733_s13 }
   0xa   : > { %p27_p1 = scmp.eq.s32.totalorder %s26_s20, 0  ;;  %p37_p2 = scmp.eq.s32.totalorder %s741_s15, 0 }
   0xb   : > { %p42_p3 = scmp.ne.s32.totalorder %s733_s13, %s729_s12  ;;  %p43_p4 = scmp.eq.s32.totalorder %s793_s16, 0 }
   0xc   : > { %s809_s21 = scalar_select %p27_p1, %s737_s14, %s29_s19  }
   0xd   : > { %p811_p5 = por %p37_p2, %p36_p0  ;;  %p815_p6 = por %p43_p4, %p42_p3 }
   0xe   : > { %p118_p7 = scmp.eq.s32.totalorder %s793_s16, 1  ;;  %p124_p8 = scmp.eq.s32.totalorder %s485_s17, 1 }
   0xf   : > { %s1006_s23 = scalar_select %p815_p6, 1, 0 }
  0x10   : > { %p562_p10 = scmp.lt.s32.totalorder %s741_s15, 2  ;;  %p822_p11 = por %p118_p7, %p36_p0 }
  0x11   : > { %p826_p12 = por %p124_p8, %p42_p3  ;;  %s831_s26 = sand.u32 1, %s737_s14  }
  0x12   : > { %s1007_s24 = scalar_select %p822_p11, 1, 0 }
  0x13   : > { %s1008_s25 = scalar_select %p826_p12, 1, 0 }
  0x14   : > { %s513_s27 = sshll.u32 %s741_s15, 7  ;;  %s488_s28 = sshll.u32 %s831_s26, 3 }
  0x15   : > { %s838_s4 = scalar_lea.hbm %s999_s0, %s513_s27  ;;  %s148_s5 = scalar_lea.vmem [#allocation2], %s488_s28 }
  0x16   : > { %s155_s6 = sshll.u32 %s148_s5, 4  ;;  %p842_p13 = pnand %p562_p10, %p811_p5  ;;  %s846_s6 = int_to_ptr.vmem [resolvable:$true] %s155_s6 }
  0x17   : > { %s145_s8 = scalar_lea.sflag [#allocation3], %s831_s26  ;;  %s611_s9 = scalar_lea.hbm %s838_s4, 128 }
  0x18   : > { %p612_p0 = scmp.ne.s32.totalorder %s838_s4, %s611_s9  ;;  %p613_p1 = pneg %p842_p13 }
  0x19   : > { %s616_s17 = scalar_lea.hbm %s999_s0, 256  ;;  %p617_p4 = scmp.lt.u32.totalorder %s838_s4, %s999_s0 }
  0x1a   : > { %p614_p2 = pnand %p613_p1, %p612_p0  ;;  %p618_p5 = scmp.lt.u32.totalorder %s616_s17, %s611_s9 }
  0x1b   : > { %p620_p8 = scmp.lt.u32.totalorder %s611_s9, %s838_s4 }
  0x1c   : > { %p615_p3 = pneg %p614_p2  ;;  %p619_p7 = por %p618_p5, %p617_p4 }
  0x1e   : > { %p621_p10 = por %p620_p8, %p619_p7 }
  0x20   : > { %p622_p9 = pnand %p621_p10, %p615_p3 }
  0x22   : > { %625 = shalt.err (!%p622_p9)
}
  0x23   : > { %s626_s22 = scalar_lea.vmem %s846_s6, 128  ;;  %s743_s27 = smov [#allocation2]  }
  0x24   : > { %p627_p0 = scmp.ne.s32.totalorder %s846_s6, %s626_s22  ;;  %s631_s28 = sshll.u32 %s743_s27, 4  ;;  %s632_s28 = int_to_ptr.vmem [resolvable:$false] %s631_s28 }
  0x25   : > { %s633_s29 = scalar_lea.vmem %s632_s28, 256  ;;  %p634_p11 = scmp.lt.s32.totalorder %s846_s6, %s632_s28 }
  0x26   : > { %p629_p2 = pnand %p627_p0, %p613_p1  ;;  %p635_p4 = scmp.lt.s32.totalorder %s633_s29, %s626_s22 }
  0x28   : > { %p630_p12 = pneg %p629_p2  ;;  %p636_p5 = por %p635_p4, %p634_p11 }
  0x2a   : > { %p637_p7 = pnand %p636_p5, %p630_p12 }
  0x2c   : > { %640 = shalt.err (!%p637_p7)
}
  0x2d   : > { %s744_s30 = smov 64   ;;  %s745_s5 = smov 4  }
  0x2e   : > { %554 = dma.hbm_to_vmem [thread:$0]  (!%p842_p13), %s838_s4, 128, %s846_s6, %s145_s8, %s744_s30, %s744_s30, %s745_s5  }
  0x2f   : > { %p494_p9 = scmp.ge.s32.totalorder %s741_s15, 1  ;;  %p190_p11 = scmp.lt.s32.totalorder %s741_s15, 3 }
  0x30   : > { %s491_s9 = sshll.u32 %s831_s26, 6  ;;  %s514_s11 = sshll.u32 %s741_s15, 10 }
  0x31   : > { %p882_p12 = pnand %p494_p9, %p190_p11  ;;  %s169_s17 = scalar_lea.vmem [#allocation5], %s491_s9 }
  0x32   : > { %s176_s19 = sshll.u32 %s169_s17, 4  ;;  %s890_s27 = scalar_lea.hbm %s1000_s1, %s514_s11  ;;  %s892_s19 = int_to_ptr.vmem [resolvable:$true] %s176_s19 }
  0x33   : > { %s166_s4 = scalar_lea.sflag [#allocation6], %s831_s26  ;;  %s641_s6 = scalar_lea.hbm %s890_s27, 1024 }
  0x34   : > { %p642_p3 = scmp.ne.s32.totalorder %s890_s27, %s641_s6  ;;  %s646_s29 = scalar_lea.hbm %s1000_s1, 2048 }
  0x35   : > { %p647_p0 = scmp.lt.u32.totalorder %s890_s27, %s1000_s1  ;;  %p648_p2 = scmp.lt.u32.totalorder %s646_s29, %s641_s6 }
  0x36   : > { %p644_p8 = pnand %p642_p3, %p613_p1  ;;  %p650_p5 = scmp.lt.u32.totalorder %s641_s6, %s890_s27 }
  0x37   : > { %p649_p4 = por %p648_p2, %p647_p0 }
  0x38   : > { %p645_p10 = pneg %p644_p8 }
  0x39   : > { %p651_p7 = por %p650_p5, %p649_p4 }
  0x3b   : > { %p652_p9 = pnand %p651_p7, %p645_p10 }
  0x3d   : > { %655 = shalt.err (!%p652_p9)
}
  0x3e   : > { %s656_s17 = scalar_lea.vmem %s892_s19, 1024  ;;  %s746_s20 = smov [#allocation5]  }
  0x3f   : > { %p657_p11 = scmp.ne.s32.totalorder %s892_s19, %s656_s17  ;;  %s661_s22 = sshll.u32 %s746_s20, 4  ;;  %s662_s22 = int_to_ptr.vmem [resolvable:$false] %s661_s22 }
  0x40   : > { %s663_s8 = scalar_lea.vmem %s662_s22, 2048  ;;  %p664_p6 = scmp.lt.s32.totalorder %s892_s19, %s662_s22 }
  0x41   : > { %p659_p3 = pnand %p657_p11, %p613_p1  ;;  %p665_p0 = scmp.lt.s32.totalorder %s663_s8, %s656_s17 }
  0x43   : > { %p660_p8 = pneg %p659_p3  ;;  %p666_p2 = por %p665_p0, %p664_p6 }
  0x45   : > { %p667_p4 = pnand %p666_p2, %p660_p8 }
  0x47   : > { %670 = shalt.err (!%p667_p4)
}
  0x48   : > { %557 = dma.hbm_to_vmem [thread:$0]  (!%p842_p13), %s890_s27, 1024, %s892_s19, %s166_s4, %s744_s30, %s744_s30, %s745_s5  }
  0x49   : > { %194 = sbr.rel (%p882_p12) target bundleno = 348 (0x15c), region = 32  ;;  %s926_s6 = sand.u32 (!%p882_p12), 1, %s733_s13  }
  0x4a   : > { %s495_s28 = sshll.u32 (!%p882_p12), %s926_s6, 3  ;;  %s197_s29 = scalar_lea.sflag (!%p882_p12), [#allocation3], %s926_s6 }
  0x4b   : > { %s930_s7 = scalar_lea.vmem (!%p882_p12), [#allocation2], %s495_s28  ;;  %p1011_p6 = scmp.ne.s32.totalorder (!%p882_p12), %s1006_s23, 0 }
  0x50   : > { %716 = dma.done.wait (%p1011_p6), %s197_s29, 128  }
  0x51   : > { %718 = vsyncadd (%p1011_p6), %s197_s29, 4294967168  ;;  %s496_s26 = sshll.u32 %s926_s6, 6  ;;  %s206_s30 = scalar_lea.sflag [#allocation6], %s926_s6 }
  0x52   : > { %s209_s5 = scalar_lea.vmem [#allocation5], %s496_s26 }
  0x53   : > { %720 = dma.done.wait (%p1011_p6), %s206_s30, 1024  }
  0x54   : > { %722 = vsyncadd (%p1011_p6), %s206_s30, 4294966272  ;;  %v747_v0 = vmov 0.0   ;;  %vm748_vm0 = vmmov 0   ;;  %v602_v1 = vld [vmem:[%s209_s5] sm:$0xff]   ;;  %v603_v2 = vld [vmem:[%s209_s5 + $0x8] sm:$0xff]   ;;  %p240_p13 = scmp.lt.s32.totalorder %s793_s16, 1 }
  0x55   : > { %525 = vmatprep.subr.bf16.mxu0 %v747_v0  ;;  %541 = vmatprep.mubr.msk.bf16.mxu0 %vm748_vm0, %v747_v0  ;;  %v604_v3 = vld [vmem:[%s209_s5 + $0x10] sm:$0xff]   ;;  %v605_v4 = vld [vmem:[%s209_s5 + $0x18] sm:$0xff]   ;;  %v606_v5 = vld [vmem:[%s209_s5 + $0x20] sm:$0xff]   ;;  %s497_s10 = sshll.u32 %s926_s6, 4  ;;  %s515_s17 = sshll.u32 %s793_s16, 8 }
  0x56   : > { %526 = vmatpush3.bf16.msra.mxu0 %v602_v1  ;;  %v607_v6 = vld [vmem:[%s209_s5 + $0x28] sm:$0xff]   ;;  %v608_v7 = vld [vmem:[%s209_s5 + $0x30] sm:$0xff]   ;;  %v609_v8 = vld [vmem:[%s209_s5 + $0x38] sm:$0xff]   ;;  %s241_s23 = scalar_select %p240_p13, %s793_s16, 1 }
  0x57   : > { %527 = vmatprep.subr.bf16.mxu0 %v747_v0  ;;  %v610_v9 = vld [vmem:[%s930_s7] sm:$0xff]   ;;  %s239_s9 = scalar_lea.vmem [#allocation7], %s497_s10  ;;  %s955_s8 = scalar_lea.hbm %s1002_s3, %s515_s17 }
  0x58   : > { %s242_s4 = scalar_lea.vmem %s1001_s2, %s241_s23  ;;  %s380_s11 = sshll.u32 %s239_s9, 4  ;;  %s950_s11 = int_to_ptr.vmem [resolvable:$true] %s380_s11 }
  0x59   : > { %v498_v10 = vld [vmem:[%s242_s4] ss:$0 sm:$0xff]  ;;  %s367_s28 = scalar_lea.sflag [#allocation4], %s926_s6  ;;  %s671_s16 = scalar_lea.vmem %s950_s11, 256 }
  0x5a   : > { %528 = vmatpush3.bf16.msra.mxu0 %v603_v2  ;;  %p672_p1 = scmp.ne.s32.totalorder %s950_s11, %s671_s16  ;;  %p1012_p12 = scmp.ne.s32.totalorder %s1007_s24, 0 }
  0x5b   : > { %529 = vmatprep.subr.bf16.mxu0 %v747_v0  ;;  %s749_s29 = smov [#allocation7]  }
  0x5c   : > { %p673_p10 = pnand %p672_p1, %p1012_p12  ;;  %s675_s7 = sshll.u32 %s749_s29, 4  ;;  %s676_s7 = int_to_ptr.vmem [resolvable:$false] %s675_s7 }
  0x5d   : > { %s677_s26 = scalar_lea.vmem %s676_s7, 512  ;;  %p678_p7 = scmp.lt.s32.totalorder %s950_s11, %s676_s7 }
  0x5e   : > { %530 = vmatpush3.bf16.msra.mxu0 %v604_v3  ;;  %p674_p5 = pneg %p673_p10  ;;  %p679_p9 = scmp.lt.s32.totalorder %s677_s26, %s671_s16 }
  0x5f   : > { %531 = vmatprep.subr.bf16.mxu0 %v747_v0 }
  0x60   : > { %p680_p11 = por %p679_p9, %p678_p7 }
  0x62   : > { %532 = vmatpush3.bf16.msra.mxu0 %v605_v4  ;;  %p681_p3 = pnand %p680_p11, %p674_p5 }
  0x63   : > { %533 = vmatprep.subr.bf16.mxu0 %v747_v0 }
  0x66   : > { %534 = vmatpush3.bf16.msra.mxu0 %v606_v5 }
  0x67   : > { %535 = vmatprep.subr.bf16.mxu0 %v747_v0 }
  0x6a   : > { %536 = vmatpush3.bf16.msra.mxu0 %v607_v6 }
  0x6b   : > { %537 = vmatprep.subr.bf16.mxu0 %v747_v0 }
  0x6e   : > { %538 = vmatpush3.bf16.msra.mxu0 %v608_v7 }
  0x6f   : > { %539 = vmatprep.subr.bf16.mxu0 %v747_v0 }
  0x72   : > { %540 = vmatpush3.bf16.msra.mxu0 %v609_v8 }
  0x75   : > { %542 = vmatmul.mubr.bf16.vlgmr.msra.gmra.mrb[0].mxu0 %v610_v9 }
 0x148   : > { %v357_v11 = vpop.f32.mrb[0].mxu0 }
 0x149   : > { %v358_v12 = vadd.f32 %v498_v10, %v357_v11  ;;  %v543_v13 = vpop.f32.mrb[1].mxu0 }
 0x14a   : > { %v360_v14 = vpop.f32.mrb[2].mxu0 }
 0x14b   : > { %364 = vst [vmem:[%s239_s9] sm:$0xff] %v358_v12  ;;  %v361_v15 = vadd.f32 %v498_v10, %v360_v14  ;;  %v544_v16 = vpop.f32.mrb[3].mxu0 }
 0x14d   : > { %365 = vst [vmem:[%s239_s9 + $0x8] sm:$0xff] %v361_v15 }
 0x14e   : > { %684 = shalt.err (!%p681_p3)
}
 0x14f   : > { %s685_s30 = scalar_lea.hbm %s955_s8, 256  ;;  %s689_s10 = scalar_lea.hbm %s1002_s3, 512 }
 0x150   : > { %p686_p8 = scmp.ne.s32.totalorder %s955_s8, %s685_s30  ;;  %p690_p4 = scmp.lt.u32.totalorder %s955_s8, %s1002_s3 }
 0x151   : > { %p691_p6 = scmp.lt.u32.totalorder %s689_s10, %s685_s30  ;;  %p693_p1 = scmp.lt.u32.totalorder %s685_s30, %s955_s8 }
 0x152   : > { %p687_p0 = pnand %p686_p8, %p1012_p12 }
 0x153   : > { %p692_p13 = por %p691_p6, %p690_p4 }
 0x154   : > { %p688_p2 = pneg %p687_p0 }
 0x155   : > { %p694_p10 = por %p693_p1, %p692_p13 }
 0x157   : > { %p695_p5 = pnand %p694_p10, %p688_p2 }
 0x159   : > { %698 = shalt.err (!%p695_p5)
}
 0x15a   : > { %s750_s4 = smov 128   ;;  %s751_s9 = smov 8  }
 0x15b   : > { %549 = dma.vmem_to_hbm [thread:$0]  (%p1012_p12), %s950_s11, 256, %s955_s8, %s367_s28, %s750_s4, %s750_s4, %s751_s9  }
 0x15c PF: > { %s395_s17 = sand.u32 1, %s729_s12   ;;  %p1013_p7 = scmp.ne.s32.totalorder %s1008_s25, 0 }
 0x15d   : > { %p1014_p9 = scmp.ge.s32.totalorder %s741_s15, 2  ;;  %s396_s20 = scalar_lea.sflag [#allocation4], %s395_s17 }
 0x15f   : > { %p559_p11 = pnand %p1014_p9, %p1013_p7 }
 0x161   : > { %724 = dma.done.wait (!%p559_p11), %s396_s20, 256  }
 0x162   : > { %726 = vsyncadd (!%p559_p11), %s396_s20, 4294967040  ;;  %p19_p3 = scmp.ge.s32.totalorder %s797_s18, 4   ;;  %s1015_s12 = smov %s733_s13 }
 0x163   : > { %s1016_s13 = smov %s737_s14  ;;  %s1017_s14 = smov %s809_s21 }
 0x164   : > { %s1018_s15 = smov %s797_s18  ;;  %21 = sbr.rel (!%p19_p3) target bundleno = 7 (0x7), region = 93 }
 0x16b   :  { %401 = vsyncpa [#allocation3], 1 }
 0x16c   :  { %403 = vsyncpa [#allocation3 + $0x1], 1 }
 0x16d   :  { %404 = vsyncpa [#allocation6], 1 }
 0x16e   :  { %406 = vsyncpa [#allocation6 + $0x1], 1 }
 0x16f   :  { %407 = vsyncpa [#allocation4], 1 }
 0x170   :  { %409 = vsyncpa [#allocation4 + $0x1], 1 }

</bundles_post_ra>
